<compile_context>
chip_gen: v7x
topology: tpu7x:2x2x1
jax: 0.10.0
libtpu: 0.0.40
codegen_flags: <defaults>
</compile_context>

<pallas_src>
import jax
import jax.numpy as jnp
from jax.experimental import pallas as pl
from jax.experimental.pallas import tpu as pltpu

K = 7          # conv kernel size
PAD = 3        # conv padding
EPS = 1e-5     # BatchNorm eps
LANE = 128     # TPU lane width
HALO = 16      # lead/trail halo rows in the conv2 scratch (bf16 sublane-tile aligned)


def _round_up(x, m):
    return (x + m - 1) // m * m


def _pick_vmem_limit():
    """Per-generation scoped-VMEM hint: ~3/4 of physical, capped at 100 MiB."""
    try:
        cap = int(pltpu.get_tpu_info().vmem_capacity_bytes)
    except Exception:
        cap = 64 * 1024 * 1024  # conservative (v7x-safe) fallback
    return min(cap * 3 // 4, 100 * 1024 * 1024)


VMEM_LIMIT = _pick_vmem_limit()


# --------------------------------------------------------------------------- kernels


def conv_relu_stats_kernel(x_ref, w_ref, h_ref, stats_ref):
    """h = relu(conv1d(x)) for one sample; accumulate BN sum / sum-of-squares.

    Works for both conv1 layouts:
      * packed patches:  x block (1, L, KC_p),        w (1, KC_p, Cout_p)   -> 1 dot
      * halo-padded:     x block (1, L+2*PAD, Cin_p), w (K, Cin_p, Cout_p)  -> K dots
    """
    n = pl.program_id(0)
    L = h_ref.shape[1]
    taps = w_ref.shape[0]

    @pl.when(n == 0)
    def _():
        stats_ref[...] = jnp.zeros_like(stats_ref)

    acc = jnp.dot(x_ref[0, pl.ds(0, L), :], w_ref[0],
                  preferred_element_type=jnp.float32)
    for t in range(1, taps):
        acc += jnp.dot(x_ref[0, pl.ds(t, L), :], w_ref[t],
                       preferred_element_type=jnp.float32)
    h = jnp.maximum(acc, 0.0)                                  # ReLU in f32
    h_ref[0] = h.astype(h_ref.dtype)                           # bf16 store by default

    stats_ref[0:1, :] = stats_ref[0:1, :] + jnp.sum(h, axis=0, keepdims=True)
    stats_ref[1:2, :] = stats_ref[1:2, :] + jnp.sum(h * h, axis=0, keepdims=True)


def bn_conv_relu_stats_kernel(h1_ref, sc_ref, sh_ref, w_ref,
                              h2_ref, stats_ref, hpad_ref):
    """BN1-apply (precomputed scale/shift) + conv2 + ReLU + BN2-stat accumulation."""
    n = pl.program_id(0)
    L = h1_ref.shape[1]
    Cp = hpad_ref.shape[1]

    @pl.when(n == 0)
    def _():
        stats_ref[...] = jnp.zeros_like(stats_ref)
        # Zero only the halo rows of the conv scratch, once; they stay zero.
        hpad_ref[0:HALO, :] = jnp.zeros((HALO, Cp), hpad_ref.dtype)
        hpad_ref[HALO + L:HALO + L + HALO, :] = jnp.zeros((HALO, Cp), hpad_ref.dtype)

    y = h1_ref[0].astype(jnp.float32) * sc_ref[...] + sh_ref[...]   # BN1 apply, f32
    hpad_ref[HALO:HALO + L, :] = y.astype(hpad_ref.dtype)           # tile-aligned store

    acc = jnp.dot(hpad_ref[pl.ds(HALO - PAD, L), :], w_ref[0],
                  preferred_element_type=jnp.float32)
    for t in range(1, K):
        acc += jnp.dot(hpad_ref[pl.ds(HALO - PAD + t, L), :], w_ref[t],
                       preferred_element_type=jnp.float32)
    h = jnp.maximum(acc, 0.0)
    h2_ref[0] = h.astype(h2_ref.dtype)

    stats_ref[0:1, :] = stats_ref[0:1, :] + jnp.sum(h, axis=0, keepdims=True)
    stats_ref[1:2, :] = stats_ref[1:2, :] + jnp.sum(h * h, axis=0, keepdims=True)


def bn_apply_transpose_kernel(h_ref, sc_ref, sh_ref, out_ref):
    """Final BatchNorm2 apply, fused with channel-unpad + (L,C)->(C,L) transpose."""
    cout = out_ref.shape[1]
    y = h_ref[0].astype(jnp.float32) * sc_ref[...] + sh_ref[...]    # (L, Cp) f32
    out_ref[0] = jnp.transpose(y, (1, 0))[:cout, :]                 # (Cout, L), XLU


# --------------------------------------------------------------------------- wrapper


def _bn_scale_shift(stats, gamma, beta, inv_count):
    """Finalize streamed (sum, sum_sq) into affine scale/shift (tiny f32 vector math)."""
    mean = stats[0] * inv_count
    var = jnp.maximum(stats[1] * inv_count - mean * mean, 0.0)
    scale = jax.lax.rsqrt(var + EPS) * gamma
    shift = beta - mean * scale
    return scale.reshape(1, -1), shift.reshape(1, -1)


def conv_block(x_ncl, w1, g1, b1, w2, g2, b2, *, compute_dtype=jnp.bfloat16):
    """x_ncl: (N, Cin, L) float32 (PyTorch Conv1d layout). Returns (N, Cout, L) float32."""
    N, Cin, L = x_ncl.shape
    Cout = w1.shape[0]
    Cout_p = _round_up(Cout, LANE)
    inv_count = 1.0 / float(N * L)

    # ---- layout glue: NCL -> NLC (channels-last) ----
    x_nlc = jnp.transpose(x_ncl, (0, 2, 1)).astype(jnp.float32)

    if K * Cin <= LANE:
        # Small Cin: pack the whole im2col patch into one lane-dense 128-deep LHS.
        # HBM-byte-neutral vs channel-padding to 128, but ~K x fewer MXU pushes.
        KC1 = _round_up(K * Cin, LANE)
        x_p = jnp.pad(x_nlc, ((0, 0), (PAD, PAD), (0, 0)))
        patches = jnp.concatenate([x_p[:, t:t + L, :] for t in range(K)], axis=-1)
        x_in = jnp.pad(patches, ((0, 0), (0, 0), (0, KC1 - K * Cin))).astype(compute_dtype)
        w1_k = jnp.transpose(w1, (2, 1, 0)).astype(jnp.float32).reshape(K * Cin, Cout)
        w1_f = jnp.pad(w1_k, ((0, KC1 - K * Cin), (0, Cout_p - Cout)))
        w1_f = w1_f.reshape(1, KC1, Cout_p).astype(compute_dtype)
        x_rows = L
    else:
        # Larger Cin: halo-padded channels-last input, K accumulating per-tap dots.
        Cin_p = _round_up(Cin, LANE)
        x_in = jnp.pad(x_nlc, ((0, 0), (PAD, PAD), (0, Cin_p - Cin))).astype(compute_dtype)
        w1_k = jnp.transpose(w1, (2, 1, 0)).astype(jnp.float32)          # (K, Cin, Cout)
        w1_f = jnp.pad(w1_k, ((0, 0), (0, Cin_p - Cin),
                              (0, Cout_p - Cout))).astype(compute_dtype)
        x_rows = L + 2 * PAD

    # conv2 weights: (Cout, Cout, K) -> (K, Cout_p, Cout_p), zero-padded channels.
    w2_k = jnp.transpose(w2, (2, 1, 0)).astype(jnp.float32)
    w2_f = jnp.pad(w2_k, ((0, 0), (0, Cout_p - Cout),
                          (0, Cout_p - Cout))).astype(compute_dtype)

    g1_, b1_, g2_, b2_ = (jnp.pad(v.astype(jnp.float32), (0, Cout_p - Cout))
                          for v in (g1, b1, g2, b2))

    h_spec = pl.BlockSpec((1, L, Cout_p), lambda n: (n, 0, 0))
    vec_spec = pl.BlockSpec((1, Cout_p), lambda n: (0, 0))
    stats_spec = pl.BlockSpec((2, Cout_p), lambda n: (0, 0))
    h_shape = jax.ShapeDtypeStruct((N, L, Cout_p), compute_dtype)   # bf16 intermediates
    stats_shape = jax.ShapeDtypeStruct((2, Cout_p), jnp.float32)
    params_arb = pltpu.CompilerParams(dimension_semantics=("arbitrary",),
                                      vmem_limit_bytes=VMEM_LIMIT)
    params_par = pltpu.CompilerParams(dimension_semantics=("parallel",),
                                      vmem_limit_bytes=VMEM_LIMIT)

    # ---- conv1 + ReLU + BN1 stat accumulation ----
    h1, stats1 = pl.pallas_call(
        conv_relu_stats_kernel,
        grid=(N,),
        in_specs=[
            pl.BlockSpec((1, x_rows, x_in.shape[-1]), lambda n: (n, 0, 0)),
            pl.BlockSpec(w1_f.shape, lambda n: (0, 0, 0)),
        ],
        out_specs=[h_spec, stats_spec],
        out_shape=[h_shape, stats_shape],
        compiler_params=params_arb,
    )(x_in, w1_f)

    # BN1 finalize hoisted out of the per-sample loop (tiny (Cp,) vector math).
    scale1, shift1 = _bn_scale_shift(stats1, g1_, b1_, inv_count)

    # ---- BN1 apply + conv2 + ReLU + BN2 stat accumulation ----
    h2, stats2 = pl.pallas_call(
        bn_conv_relu_stats_kernel,
        grid=(N,),
        in_specs=[
            h_spec,                                               # h1 (compute_dtype)
            vec_spec, vec_spec,                                   # BN1 scale / shift
            pl.BlockSpec((K, Cout_p, Cout_p), lambda n: (0, 0, 0)),   # w2 taps
        ],
        out_specs=[h_spec, stats_spec],
        out_shape=[h_shape, stats_shape],
        scratch_shapes=[pltpu.VMEM((L + 2 * HALO, Cout_p), compute_dtype)],
        compiler_params=params_arb,
    )(h1, scale1, shift1, w2_f)

    scale2, shift2 = _bn_scale_shift(stats2, g2_, b2_, inv_count)

    # ---- BN2 apply, fused channel-unpad + NLC->NCL transpose ----
    out_ncl = pl.pallas_call(
        bn_apply_transpose_kernel,
        grid=(N,),
        in_specs=[h_spec, vec_spec, vec_spec],
        out_specs=pl.BlockSpec((1, Cout, L), lambda n: (n, 0, 0)),
        out_shape=jax.ShapeDtypeStruct((N, Cout, L), jnp.float32),
        compiler_params=params_par,
    )(h2, scale2, shift2)

    return out_ncl


conv_block = jax.jit(conv_block, static_argnames=("compute_dtype",))


# --------------------------------------------------------------------------- reference


def reference(x, w1, g1, b1, w2, g2, b2):
    """Pure-JAX f32 reference of the PyTorch forward (training-mode BatchNorm)."""
    def conv(h, w):
        return jax.lax.conv_general_dilated(
            h, w, window_strides=(1,), padding=[(PAD, PAD)],
            dimension_numbers=('NCH', 'OIH', 'NCH'))

    def bn(h, g, b):
        m = jnp.mean(h, axis=(0, 2), keepdims=True)
        v = jnp.mean((h - m) ** 2, axis=(0, 2), keepdims=True)
        return (h - m) * jax.lax.rsqrt(v + EPS) * g.reshape(1, -1, 1) + b.reshape(1, -1, 1)

    h = bn(jnp.maximum(conv(x, w1), 0.0), g1, b1)
    return bn(jnp.maximum(conv(h, w2), 0.0), g2, b2)


if __name__ == "__main__":
    def run_case(N, Cin, Cout, L, key):
        k1, k2, k3 = jax.random.split(key, 3)
        x = jax.random.normal(k1, (N, Cin, L), dtype=jnp.float32)
        w1 = 0.1 * jax.random.normal(k2, (Cout, Cin, K), dtype=jnp.float32)
        w2 = 0.1 * jax.random.normal(k3, (Cout, Cout, K), dtype=jnp.float32)
        g1 = jnp.ones((Cout,), jnp.float32)
        b1 = jnp.zeros((Cout,), jnp.float32)
        g2 = jnp.ones((Cout,), jnp.float32)
        b2 = jnp.zeros((Cout,), jnp.float32)

        ref = jax.block_until_ready(reference(x, w1, g1, b1, w2, g2, b2))

        # exactness check: f32 MXU operands + f32 intermediates
        out_f32 = jax.block_until_ready(
            conv_block(x, w1, g1, b1, w2, g2, b2, compute_dtype=jnp.float32))
        assert out_f32.shape == (N, Cout, L)
        err = float(jnp.max(jnp.abs(out_f32 - ref)))
        assert jnp.allclose(out_f32, ref, rtol=1e-3, atol=1e-3), err

        # performance-default path: bf16 MXU operands / bf16 intermediates, f32 BN math
        out_bf16 = jax.block_until_ready(
            conv_block(x, w1, g1, b1, w2, g2, b2, compute_dtype=jnp.bfloat16))
        err_bf16 = float(jnp.max(jnp.abs(out_bf16 - ref)))
        assert jnp.allclose(out_bf16, ref, rtol=1e-1, atol=1e-1), err_bf16

    key = jax.random.PRNGKey(0)
    ka, kb = jax.random.split(key)
    run_case(2, 4, 8, 16, ka)     # small Cin  -> packed-patch (single-dot) conv1 path
    run_case(2, 24, 16, 32, kb)   # larger Cin -> halo-padded per-tap conv1 path
    print("KERNEL_OK")
</pallas_src>

<mosaic_0001>
module attributes {stable_mosaic.version = 11 : i64} {
  func.func @conv_relu_stats_kernel(%arg0: i32, %arg1: memref<1x16x128xf32, #tpu.memory_space<vmem>>, %arg2: memref<1x128x128xf32, #tpu.memory_space<vmem>>, %arg3: memref<1x16x128xf32, #tpu.memory_space<vmem>>, %arg4: memref<2x128xf32, #tpu.memory_space<vmem>>) attributes {dimension_semantics = [#tpu.dimension_semantics<arbitrary>], iteration_bounds = array<i64: 2>, scalar_prefetch = 0 : i64, scratch_operands = 0 : i64, tpu.core_type = #tpu.core_type<tc>, window_params = [{transform_indices = @transform_0, window_bounds = array<i64: 1, 16, 128>}, {pipeline_mode = #tpu.pipeline_mode<synchronous>, transform_indices = @transform_1, window_bounds = array<i64: 1, 128, 128>}, {transform_indices = @transform_2, window_bounds = array<i64: 1, 16, 128>}, {pipeline_mode = #tpu.pipeline_mode<synchronous>, transform_indices = @transform_3, window_bounds = array<i64: 2, 128>}]} {
    %c0_i32 = arith.constant 0 : i32
    %0 = arith.cmpi eq, %arg0, %c0_i32 : i32
    %1 = arith.extui %0 : i1 to i32
    %c0_i32_0 = arith.constant 0 : i32
    %2 = arith.cmpi ne, %1, %c0_i32_0 : i32
    scf.if %2 {
      %cst_19 = arith.constant 0.000000e+00 : f32
      %24 = vector.broadcast %cst_19 : f32 to vector<2x128xf32>
      %c0_20 = arith.constant 0 : index
      %c0_21 = arith.constant 0 : index
      %25 = vector.load %arg4[%c0_20, %c0_21] : memref<2x128xf32, #tpu.memory_space<vmem>>, vector<2x128xf32>
      tpu.vector_store %arg4[%c0_20, %c0_21], %24 {strides = array<i32>} : memref<2x128xf32, #tpu.memory_space<vmem>>, vector<2x128xf32>,
    } else {
    }
    %c0 = arith.constant 0 : index
    %c0_1 = arith.constant 0 : index
    %c0_2 = arith.constant 0 : index
    %3 = vector.load %arg1[%c0, %c0_1, %c0_2] : memref<1x16x128xf32, #tpu.memory_space<vmem>>, vector<1x16x128xf32>
    %4 = vector.shape_cast %3 : vector<1x16x128xf32> to vector<16x128xf32>
    %c0_3 = arith.constant 0 : index
    %c0_4 = arith.constant 0 : index
    %c0_5 = arith.constant 0 : index
    %5 = vector.load %arg2[%c0_3, %c0_4, %c0_5] : memref<1x128x128xf32, #tpu.memory_space<vmem>>, vector<1x128x128xf32>
    %6 = vector.shape_cast %5 : vector<1x128x128xf32> to vector<128x128xf32>
    %cst = arith.constant dense<0.000000e+00> : vector<16x128xf32>
    %7 = tpu.matmul %4, %6, %cst {dimension_numbers = #tpu.dot_dimension_numbers<[1], [0], [0], [1], [0, 0, 1, 1], [], []>} : vector<16x128xf32>, vector<128x128xf32>, vector<16x128xf32> -> vector<16x128xf32>
    %cst_6 = arith.constant 0.000000e+00 : f32
    %8 = vector.broadcast %cst_6 : f32 to vector<16x128xf32>
    %9 = arith.maximumf %7, %8 : vector<16x128xf32>
    %c0_7 = arith.constant 0 : index
    %c0_8 = arith.constant 0 : index
    %c0_9 = arith.constant 0 : index
    %10 = vector.load %arg3[%c0_7, %c0_8, %c0_9] : memref<1x16x128xf32, #tpu.memory_space<vmem>>, vector<1x16x128xf32>
    %11 = vector.shape_cast %10 : vector<1x16x128xf32> to vector<16x128xf32>
    %12 = vector.shape_cast %9 : vector<16x128xf32> to vector<1x16x128xf32>
    tpu.vector_store %arg3[%c0_7, %c0_8, %c0_9], %12 {strides = array<i32>} : memref<1x16x128xf32, #tpu.memory_space<vmem>>, vector<1x16x128xf32>,
    %c0_10 = arith.constant 0 : index
    %c0_11 = arith.constant 0 : index
    %13 = vector.load %arg4[%c0_10, %c0_11] : memref<2x128xf32, #tpu.memory_space<vmem>>, vector<1x128xf32>
    %cst_12 = arith.constant dense<0.000000e+00> : vector<128xf32>
    %14 = vector.multi_reduction <add>, %9, %cst_12 [0] : vector<16x128xf32> to vector<128xf32>
    %15 = vector.shape_cast %14 : vector<128xf32> to vector<1x128xf32>
    %16 = arith.addf %13, %15 : vector<1x128xf32>
    %c0_13 = arith.constant 0 : index
    %c0_14 = arith.constant 0 : index
    %17 = vector.load %arg4[%c0_13, %c0_14] : memref<2x128xf32, #tpu.memory_space<vmem>>, vector<1x128xf32>
    tpu.vector_store %arg4[%c0_13, %c0_14], %16 {strides = array<i32>} : memref<2x128xf32, #tpu.memory_space<vmem>>, vector<1x128xf32>,
    %c1 = arith.constant 1 : index
    %c0_15 = arith.constant 0 : index
    %18 = vector.load %arg4[%c1, %c0_15] : memref<2x128xf32, #tpu.memory_space<vmem>>, vector<1x128xf32>
    %19 = arith.mulf %9, %9 : vector<16x128xf32>
    %cst_16 = arith.constant dense<0.000000e+00> : vector<128xf32>
    %20 = vector.multi_reduction <add>, %19, %cst_16 [0] : vector<16x128xf32> to vector<128xf32>
    %21 = vector.shape_cast %20 : vector<128xf32> to vector<1x128xf32>
    %22 = arith.addf %18, %21 : vector<1x128xf32>
    %c1_17 = arith.constant 1 : index
    %c0_18 = arith.constant 0 : index
    %23 = vector.load %arg4[%c1_17, %c0_18] : memref<2x128xf32, #tpu.memory_space<vmem>>, vector<1x128xf32>
    tpu.vector_store %arg4[%c1_17, %c0_18], %22 {strides = array<i32>} : memref<2x128xf32, #tpu.memory_space<vmem>>, vector<1x128xf32>,
    return
  }
  func.func @transform_0(%arg0: i32) -> (i32, i32, i32) {
    %c0_i32 = arith.constant 0 : i32
    %c0_i32_0 = arith.constant 0 : i32
    %c0_i32_1 = arith.constant 0 : i32
    return %arg0, %c0_i32, %c0_i32_0 : i32, i32, i32
  }
  func.func @transform_1(%arg0: i32) -> (i32, i32, i32) {
    %c0_i32 = arith.constant 0 : i32
    %c0_i32_0 = arith.constant 0 : i32
    %c0_i32_1 = arith.constant 0 : i32
    %c0_i32_2 = arith.constant 0 : i32
    return %c0_i32, %c0_i32_0, %c0_i32_1 : i32, i32, i32
  }
  func.func @transform_2(%arg0: i32) -> (i32, i32, i32) {
    %c0_i32 = arith.constant 0 : i32
    %c0_i32_0 = arith.constant 0 : i32
    %c0_i32_1 = arith.constant 0 : i32
    return %arg0, %c0_i32, %c0_i32_0 : i32, i32, i32
  }
  func.func @transform_3(%arg0: i32) -> (i32, i32) {
    %c0_i32 = arith.constant 0 : i32
    %c0_i32_0 = arith.constant 0 : i32
    %c0_i32_1 = arith.constant 0 : i32
    return %c0_i32, %c0_i32_0 : i32, i32
  }
}

module attributes {stable_mosaic.version = 11 : i64} {
  func.func @bn_apply_transpose_kernel(%arg0: i32, %arg1: memref<1x16x128xf32, #tpu.memory_space<vmem>>, %arg2: memref<1x128xf32, #tpu.memory_space<vmem>>, %arg3: memref<1x128xf32, #tpu.memory_space<vmem>>, %arg4: memref<1x8x16xf32, #tpu.memory_space<vmem>>) attributes {dimension_semantics = [#tpu.dimension_semantics<parallel>], iteration_bounds = array<i64: 2>, scalar_prefetch = 0 : i64, scratch_operands = 0 : i64, tpu.core_type = #tpu.core_type<tc>, window_params = [{transform_indices = @transform_0, window_bounds = array<i64: 1, 16, 128>}, {pipeline_mode = #tpu.pipeline_mode<synchronous>, transform_indices = @transform_1, window_bounds = array<i64: 1, 128>}, {pipeline_mode = #tpu.pipeline_mode<synchronous>, transform_indices = @transform_2, window_bounds = array<i64: 1, 128>}, {transform_indices = @transform_3, window_bounds = array<i64: 1, 8, 16>}]} {
    %c0 = arith.constant 0 : index
    %c0_0 = arith.constant 0 : index
    %c0_1 = arith.constant 0 : index
    %0 = vector.load %arg1[%c0, %c0_0, %c0_1] : memref<1x16x128xf32, #tpu.memory_space<vmem>>, vector<1x16x128xf32>
    %1 = vector.shape_cast %0 : vector<1x16x128xf32> to vector<16x128xf32>
    %c0_2 = arith.constant 0 : index
    %c0_3 = arith.constant 0 : index
    %2 = vector.load %arg2[%c0_2, %c0_3] : memref<1x128xf32, #tpu.memory_space<vmem>>, vector<1x128xf32>
    %3 = vector.broadcast %2 : vector<1x128xf32> to vector<16x128xf32>
    %4 = arith.mulf %1, %3 : vector<16x128xf32>
    %c0_4 = arith.constant 0 : index
    %c0_5 = arith.constant 0 : index
    %5 = vector.load %arg3[%c0_4, %c0_5] : memref<1x128xf32, #tpu.memory_space<vmem>>, vector<1x128xf32>
    %6 = vector.broadcast %5 : vector<1x128xf32> to vector<16x128xf32>
    %7 = arith.addf %4, %6 : vector<16x128xf32>
    %8 = tpu.transpose %7, [1, 0] : vector<16x128xf32> -> vector<128x16xf32>
    %9 = vector.extract_strided_slice %8 {offsets = [0, 0], sizes = [8, 16], strides = [1, 1]} : vector<128x16xf32> to vector<8x16xf32>
    %c0_6 = arith.constant 0 : index
    %c0_7 = arith.constant 0 : index
    %c0_8 = arith.constant 0 : index
    %10 = vector.load %arg4[%c0_6, %c0_7, %c0_8] : memref<1x8x16xf32, #tpu.memory_space<vmem>>, vector<1x8x16xf32>
    %11 = vector.shape_cast %10 : vector<1x8x16xf32> to vector<8x16xf32>
    %12 = vector.shape_cast %9 : vector<8x16xf32> to vector<1x8x16xf32>
    tpu.vector_store %arg4[%c0_6, %c0_7, %c0_8], %12 {strides = array<i32>} : memref<1x8x16xf32, #tpu.memory_space<vmem>>, vector<1x8x16xf32>,
    return
  }
  func.func @transform_0(%arg0: i32) -> (i32, i32, i32) {
    %c0_i32 = arith.constant 0 : i32
    %c0_i32_0 = arith.constant 0 : i32
    %c0_i32_1 = arith.constant 0 : i32
    return %arg0, %c0_i32, %c0_i32_0 : i32, i32, i32
  }
  func.func @transform_1(%arg0: i32) -> (i32, i32) {
    %c0_i32 = arith.constant 0 : i32
    %c0_i32_0 = arith.constant 0 : i32
    %c0_i32_1 = arith.constant 0 : i32
    return %c0_i32, %c0_i32_0 : i32, i32
  }
  func.func @transform_2(%arg0: i32) -> (i32, i32) {
    %c0_i32 = arith.constant 0 : i32
    %c0_i32_0 = arith.constant 0 : i32
    %c0_i32_1 = arith.constant 0 : i32
    return %c0_i32, %c0_i32_0 : i32, i32
  }
  func.func @transform_3(%arg0: i32) -> (i32, i32, i32) {
    %c0_i32 = arith.constant 0 : i32
    %c0_i32_0 = arith.constant 0 : i32
    %c0_i32_1 = arith.constant 0 : i32
    return %arg0, %c0_i32, %c0_i32_0 : i32, i32, i32
  }
}

module attributes {stable_mosaic.version = 11 : i64} {
  func.func @bn_conv_relu_stats_kernel(%arg0: i32, %arg1: memref<1x16x128xf32, #tpu.memory_space<vmem>>, %arg2: memref<1x128xf32, #tpu.memory_space<vmem>>, %arg3: memref<1x128xf32, #tpu.memory_space<vmem>>, %arg4: memref<7x128x128xf32, #tpu.memory_space<vmem>>, %arg5: memref<1x16x128xf32, #tpu.memory_space<vmem>>, %arg6: memref<2x128xf32, #tpu.memory_space<vmem>>, %arg7: memref<48x128xf32, #tpu.memory_space<vmem>>) attributes {dimension_semantics = [#tpu.dimension_semantics<arbitrary>], iteration_bounds = array<i64: 2>, scalar_prefetch = 0 : i64, scratch_operands = 1 : i64, tpu.core_type = #tpu.core_type<tc>, window_params = [{transform_indices = @transform_0, window_bounds = array<i64: 1, 16, 128>}, {pipeline_mode = #tpu.pipeline_mode<synchronous>, transform_indices = @transform_1, window_bounds = array<i64: 1, 128>}, {pipeline_mode = #tpu.pipeline_mode<synchronous>, transform_indices = @transform_2, window_bounds = array<i64: 1, 128>}, {pipeline_mode = #tpu.pipeline_mode<synchronous>, transform_indices = @transform_3, window_bounds = array<i64: 7, 128, 128>}, {transform_indices = @transform_4, window_bounds = array<i64: 1, 16, 128>}, {pipeline_mode = #tpu.pipeline_mode<synchronous>, transform_indices = @transform_5, window_bounds = array<i64: 2, 128>}]} {
    %c0_i32 = arith.constant 0 : i32
    %0 = arith.cmpi eq, %arg0, %c0_i32 : i32
    %1 = arith.extui %0 : i1 to i32
    %c0_i32_0 = arith.constant 0 : i32
    %2 = arith.cmpi ne, %1, %c0_i32_0 : i32
    scf.if %2 {
      %cst_51 = arith.constant 0.000000e+00 : f32
      %62 = vector.broadcast %cst_51 : f32 to vector<2x128xf32>
      %c0_52 = arith.constant 0 : index
      %c0_53 = arith.constant 0 : index
      %63 = vector.load %arg6[%c0_52, %c0_53] : memref<2x128xf32, #tpu.memory_space<vmem>>, vector<2x128xf32>
      tpu.vector_store %arg6[%c0_52, %c0_53], %62 {strides = array<i32>} : memref<2x128xf32, #tpu.memory_space<vmem>>, vector<2x128xf32>,
      %cst_54 = arith.constant 0.000000e+00 : f32
      %64 = vector.broadcast %cst_54 : f32 to vector<16x128xf32>
      %c0_55 = arith.constant 0 : index
      %c0_56 = arith.constant 0 : index
      %65 = vector.load %arg7[%c0_55, %c0_56] : memref<48x128xf32, #tpu.memory_space<vmem>>, vector<16x128xf32>
      tpu.vector_store %arg7[%c0_55, %c0_56], %64 {strides = array<i32>} : memref<48x128xf32, #tpu.memory_space<vmem>>, vector<16x128xf32>,
      %cst_57 = arith.constant 0.000000e+00 : f32
      %66 = vector.broadcast %cst_57 : f32 to vector<16x128xf32>
      %c32 = arith.constant 32 : index
      %c0_58 = arith.constant 0 : index
      %67 = vector.load %arg7[%c32, %c0_58] : memref<48x128xf32, #tpu.memory_space<vmem>>, vector<16x128xf32>
      tpu.vector_store %arg7[%c32, %c0_58], %66 {strides = array<i32>} : memref<48x128xf32, #tpu.memory_space<vmem>>, vector<16x128xf32>,
    } else {
    }
    %c0 = arith.constant 0 : index
    %c0_1 = arith.constant 0 : index
    %c0_2 = arith.constant 0 : index
    %3 = vector.load %arg1[%c0, %c0_1, %c0_2] : memref<1x16x128xf32, #tpu.memory_space<vmem>>, vector<1x16x128xf32>
    %4 = vector.shape_cast %3 : vector<1x16x128xf32> to vector<16x128xf32>
    %c0_3 = arith.constant 0 : index
    %c0_4 = arith.constant 0 : index
    %5 = vector.load %arg2[%c0_3, %c0_4] : memref<1x128xf32, #tpu.memory_space<vmem>>, vector<1x128xf32>
    %6 = vector.broadcast %5 : vector<1x128xf32> to vector<16x128xf32>
    %7 = arith.mulf %4, %6 : vector<16x128xf32>
    %c0_5 = arith.constant 0 : index
    %c0_6 = arith.constant 0 : index
    %8 = vector.load %arg3[%c0_5, %c0_6] : memref<1x128xf32, #tpu.memory_space<vmem>>, vector<1x128xf32>
    %9 = vector.broadcast %8 : vector<1x128xf32> to vector<16x128xf32>
    %10 = arith.addf %7, %9 : vector<16x128xf32>
    %c16 = arith.constant 16 : index
    %c0_7 = arith.constant 0 : index
    %11 = vector.load %arg7[%c16, %c0_7] : memref<48x128xf32, #tpu.memory_space<vmem>>, vector<16x128xf32>
    tpu.vector_store %arg7[%c16, %c0_7], %10 {strides = array<i32>} : memref<48x128xf32, #tpu.memory_space<vmem>>, vector<16x128xf32>,
    %c13 = arith.constant 13 : index
    %c0_8 = arith.constant 0 : index
    %12 = vector.load %arg7[%c13, %c0_8] : memref<48x128xf32, #tpu.memory_space<vmem>>, vector<16x128xf32>
    %c0_9 = arith.constant 0 : index
    %c0_10 = arith.constant 0 : index
    %c0_11 = arith.constant 0 : index
    %13 = vector.load %arg4[%c0_9, %c0_10, %c0_11] : memref<7x128x128xf32, #tpu.memory_space<vmem>>, vector<1x128x128xf32>
    %14 = vector.shape_cast %13 : vector<1x128x128xf32> to vector<128x128xf32>
    %cst = arith.constant dense<0.000000e+00> : vector<16x128xf32>
    %15 = tpu.matmul %12, %14, %cst {dimension_numbers = #tpu.dot_dimension_numbers<[1], [0], [0], [1], [0, 0, 1, 1], [], []>} : vector<16x128xf32>, vector<128x128xf32>, vector<16x128xf32> -> vector<16x128xf32>
    %c14 = arith.constant 14 : index
    %c0_12 = arith.constant 0 : index
    %16 = vector.load %arg7[%c14, %c0_12] : memref<48x128xf32, #tpu.memory_space<vmem>>, vector<16x128xf32>
    %c1 = arith.constant 1 : index
    %c0_13 = arith.constant 0 : index
    %c0_14 = arith.constant 0 : index
    %17 = vector.load %arg4[%c1, %c0_13, %c0_14] : memref<7x128x128xf32, #tpu.memory_space<vmem>>, vector<1x128x128xf32>
    %18 = vector.shape_cast %17 : vector<1x128x128xf32> to vector<128x128xf32>
    %cst_15 = arith.constant dense<0.000000e+00> : vector<16x128xf32>
    %19 = tpu.matmul %16, %18, %cst_15 {dimension_numbers = #tpu.dot_dimension_numbers<[1], [0], [0], [1], [0, 0, 1, 1], [], []>} : vector<16x128xf32>, vector<128x128xf32>, vector<16x128xf32> -> vector<16x128xf32>
    %20 = arith.addf %15, %19 : vector<16x128xf32>
    %c15 = arith.constant 15 : index
    %c0_16 = arith.constant 0 : index
    %21 = vector.load %arg7[%c15, %c0_16] : memref<48x128xf32, #tpu.memory_space<vmem>>, vector<16x128xf32>
    %c2 = arith.constant 2 : index
    %c0_17 = arith.constant 0 : index
    %c0_18 = arith.constant 0 : index
    %22 = vector.load %arg4[%c2, %c0_17, %c0_18] : memref<7x128x128xf32, #tpu.memory_space<vmem>>, vector<1x128x128xf32>
    %23 = vector.shape_cast %22 : vector<1x128x128xf32> to vector<128x128xf32>
    %cst_19 = arith.constant dense<0.000000e+00> : vector<16x128xf32>
    %24 = tpu.matmul %21, %23, %cst_19 {dimension_numbers = #tpu.dot_dimension_numbers<[1], [0], [0], [1], [0, 0, 1, 1], [], []>} : vector<16x128xf32>, vector<128x128xf32>, vector<16x128xf32> -> vector<16x128xf32>
    %25 = arith.addf %20, %24 : vector<16x128xf32>
    %c16_20 = arith.constant 16 : index
    %c0_21 = arith.constant 0 : index
    %26 = vector.load %arg7[%c16_20, %c0_21] : memref<48x128xf32, #tpu.memory_space<vmem>>, vector<16x128xf32>
    %c3 = arith.constant 3 : index
    %c0_22 = arith.constant 0 : index
    %c0_23 = arith.constant 0 : index
    %27 = vector.load %arg4[%c3, %c0_22, %c0_23] : memref<7x128x128xf32, #tpu.memory_space<vmem>>, vector<1x128x128xf32>
    %28 = vector.shape_cast %27 : vector<1x128x128xf32> to vector<128x128xf32>
    %cst_24 = arith.constant dense<0.000000e+00> : vector<16x128xf32>
    %29 = tpu.matmul %26, %28, %cst_24 {dimension_numbers = #tpu.dot_dimension_numbers<[1], [0], [0], [1], [0, 0, 1, 1], [], []>} : vector<16x128xf32>, vector<128x128xf32>, vector<16x128xf32> -> vector<16x128xf32>
    %30 = arith.addf %25, %29 : vector<16x128xf32>
    %c17 = arith.constant 17 : index
    %c0_25 = arith.constant 0 : index
    %31 = vector.load %arg7[%c17, %c0_25] : memref<48x128xf32, #tpu.memory_space<vmem>>, vector<16x128xf32>
    %c4 = arith.constant 4 : index
    %c0_26 = arith.constant 0 : index
    %c0_27 = arith.constant 0 : index
    %32 = vector.load %arg4[%c4, %c0_26, %c0_27] : memref<7x128x128xf32, #tpu.memory_space<vmem>>, vector<1x128x128xf32>
    %33 = vector.shape_cast %32 : vector<1x128x128xf32> to vector<128x128xf32>
    %cst_28 = arith.constant dense<0.000000e+00> : vector<16x128xf32>
    %34 = tpu.matmul %31, %33, %cst_28 {dimension_numbers = #tpu.dot_dimension_numbers<[1], [0], [0], [1], [0, 0, 1, 1], [], []>} : vector<16x128xf32>, vector<128x128xf32>, vector<16x128xf32> -> vector<16x128xf32>
    %35 = arith.addf %30, %34 : vector<16x128xf32>
    %c18 = arith.constant 18 : index
    %c0_29 = arith.constant 0 : index
    %36 = vector.load %arg7[%c18, %c0_29] : memref<48x128xf32, #tpu.memory_space<vmem>>, vector<16x128xf32>
    %c5 = arith.constant 5 : index
    %c0_30 = arith.constant 0 : index
    %c0_31 = arith.constant 0 : index
    %37 = vector.load %arg4[%c5, %c0_30, %c0_31] : memref<7x128x128xf32, #tpu.memory_space<vmem>>, vector<1x128x128xf32>
    %38 = vector.shape_cast %37 : vector<1x128x128xf32> to vector<128x128xf32>
    %cst_32 = arith.constant dense<0.000000e+00> : vector<16x128xf32>
    %39 = tpu.matmul %36, %38, %cst_32 {dimension_numbers = #tpu.dot_dimension_numbers<[1], [0], [0], [1], [0, 0, 1, 1], [], []>} : vector<16x128xf32>, vector<128x128xf32>, vector<16x128xf32> -> vector<16x128xf32>
    %40 = arith.addf %35, %39 : vector<16x128xf32>
    %c19 = arith.constant 19 : index
    %c0_33 = arith.constant 0 : index
    %41 = vector.load %arg7[%c19, %c0_33] : memref<48x128xf32, #tpu.memory_space<vmem>>, vector<16x128xf32>
    %c6 = arith.constant 6 : index
    %c0_34 = arith.constant 0 : index
    %c0_35 = arith.constant 0 : index
    %42 = vector.load %arg4[%c6, %c0_34, %c0_35] : memref<7x128x128xf32, #tpu.memory_space<vmem>>, vector<1x128x128xf32>
    %43 = vector.shape_cast %42 : vector<1x128x128xf32> to vector<128x128xf32>
    %cst_36 = arith.constant dense<0.000000e+00> : vector<16x128xf32>
    %44 = tpu.matmul %41, %43, %cst_36 {dimension_numbers = #tpu.dot_dimension_numbers<[1], [0], [0], [1], [0, 0, 1, 1], [], []>} : vector<16x128xf32>, vector<128x128xf32>, vector<16x128xf32> -> vector<16x128xf32>
    %45 = arith.addf %40, %44 : vector<16x128xf32>
    %cst_37 = arith.constant 0.000000e+00 : f32
    %46 = vector.broadcast %cst_37 : f32 to vector<16x128xf32>
    %47 = arith.maximumf %45, %46 : vector<16x128xf32>
    %c0_38 = arith.constant 0 : index
    %c0_39 = arith.constant 0 : index
    %c0_40 = arith.constant 0 : index
    %48 = vector.load %arg5[%c0_38, %c0_39, %c0_40] : memref<1x16x128xf32, #tpu.memory_space<vmem>>, vector<1x16x128xf32>
    %49 = vector.shape_cast %48 : vector<1x16x128xf32> to vector<16x128xf32>
    %50 = vector.shape_cast %47 : vector<16x128xf32> to vector<1x16x128xf32>
    tpu.vector_store %arg5[%c0_38, %c0_39, %c0_40], %50 {strides = array<i32>} : memref<1x16x128xf32, #tpu.memory_space<vmem>>, vector<1x16x128xf32>,
    %c0_41 = arith.constant 0 : index
    %c0_42 = arith.constant 0 : index
    %51 = vector.load %arg6[%c0_41, %c0_42] : memref<2x128xf32, #tpu.memory_space<vmem>>, vector<1x128xf32>
    %cst_43 = arith.constant dense<0.000000e+00> : vector<128xf32>
    %52 = vector.multi_reduction <add>, %47, %cst_43 [0] : vector<16x128xf32> to vector<128xf32>
    %53 = vector.shape_cast %52 : vector<128xf32> to vector<1x128xf32>
    %54 = arith.addf %51, %53 : vector<1x128xf32>
    %c0_44 = arith.constant 0 : index
    %c0_45 = arith.constant 0 : index
    %55 = vector.load %arg6[%c0_44, %c0_45] : memref<2x128xf32, #tpu.memory_space<vmem>>, vector<1x128xf32>
    tpu.vector_store %arg6[%c0_44, %c0_45], %54 {strides = array<i32>} : memref<2x128xf32, #tpu.memory_space<vmem>>, vector<1x128xf32>,
    %c1_46 = arith.constant 1 : index
    %c0_47 = arith.constant 0 : index
    %56 = vector.load %arg6[%c1_46, %c0_47] : memref<2x128xf32, #tpu.memory_space<vmem>>, vector<1x128xf32>
    %57 = arith.mulf %47, %47 : vector<16x128xf32>
    %cst_48 = arith.constant dense<0.000000e+00> : vector<128xf32>
    %58 = vector.multi_reduction <add>, %57, %cst_48 [0] : vector<16x128xf32> to vector<128xf32>
    %59 = vector.shape_cast %58 : vector<128xf32> to vector<1x128xf32>
    %60 = arith.addf %56, %59 : vector<1x128xf32>
    %c1_49 = arith.constant 1 : index
    %c0_50 = arith.constant 0 : index
    %61 = vector.load %arg6[%c1_49, %c0_50] : memref<2x128xf32, #tpu.memory_space<vmem>>, vector<1x128xf32>
    tpu.vector_store %arg6[%c1_49, %c0_50], %60 {strides = array<i32>} : memref<2x128xf32, #tpu.memory_space<vmem>>, vector<1x128xf32>,
    return
  }
  func.func @transform_0(%arg0: i32) -> (i32, i32, i32) {
    %c0_i32 = arith.constant 0 : i32
    %c0_i32_0 = arith.constant 0 : i32
    %c0_i32_1 = arith.constant 0 : i32
    return %arg0, %c0_i32, %c0_i32_0 : i32, i32, i32
  }
  func.func @transform_1(%arg0: i32) -> (i32, i32) {
    %c0_i32 = arith.constant 0 : i32
    %c0_i32_0 = arith.constant 0 : i32
    %c0_i32_1 = arith.constant 0 : i32
    return %c0_i32, %c0_i32_0 : i32, i32
  }
  func.func @transform_2(%arg0: i32) -> (i32, i32) {
    %c0_i32 = arith.constant 0 : i32
    %c0_i32_0 = arith.constant 0 : i32
    %c0_i32_1 = arith.constant 0 : i32
    return %c0_i32, %c0_i32_0 : i32, i32
  }
  func.func @transform_3(%arg0: i32) -> (i32, i32, i32) {
    %c0_i32 = arith.constant 0 : i32
    %c0_i32_0 = arith.constant 0 : i32
    %c0_i32_1 = arith.constant 0 : i32
    %c0_i32_2 = arith.constant 0 : i32
    return %c0_i32, %c0_i32_0, %c0_i32_1 : i32, i32, i32
  }
  func.func @transform_4(%arg0: i32) -> (i32, i32, i32) {
    %c0_i32 = arith.constant 0 : i32
    %c0_i32_0 = arith.constant 0 : i32
    %c0_i32_1 = arith.constant 0 : i32
    return %arg0, %c0_i32, %c0_i32_0 : i32, i32, i32
  }
  func.func @transform_5(%arg0: i32) -> (i32, i32) {
    %c0_i32 = arith.constant 0 : i32
    %c0_i32_0 = arith.constant 0 : i32
    %c0_i32_1 = arith.constant 0 : i32
    return %c0_i32, %c0_i32_0 : i32, i32
  }
}

</mosaic_0001>

<bundles_post_ra>
// kernel: conv_block.5
= control target key start
LH: loop header
LB: loop body
LE: loop exit
PB: predicated region body
PF: predicated region fallthrough
CT: control target
= control target key end

     0   :  { %8 = vsyncpa [#allocation3], 0  ;;  %s541_s0 = inlined_call_operand.vmem [shape: f32[2,16,128], index: 0, kind: input, shape index: {}]   ;;  %s542_s1 = inlined_call_operand.vmem [shape: f32[1,128], index: 1, kind: input, shape index: {}]   ;;  %s543_s2 = inlined_call_operand.vmem [shape: f32[1,128], index: 2, kind: input, shape index: {}]   ;;  %s544_s3 = inlined_call_operand.hbm [shape: f32[2,8,16], index: 3, kind: output, shape index: {}]  }
   0x1   :  { %10 = vsyncpa [#allocation3 + $0x1], 0  ;;  %s435_s12 = smov 0   ;;  %s437_s13 = smov 0  }
   0x2   :  { %s439_s14 = smov 0   ;;  %s441_s15 = smov 0  }
   0x3 LB: > { %s456_s16 = sadd.s32 4294967295, %s412_s15   ;;  %s296_s17 = sadd.s32 4294967294, %s412_s15   ;;  %s412_s15 = sphi %s441_s15, %s550_s15   ;;  %s408_s14 = sphi %s439_s14, %s549_s14   ;;  %s404_s13 = sphi %s437_s13, %s548_s13   ;;  %s400_s12 = sphi %s435_s12, %s547_s12  }
   0x4   : > { %s460_s18 = sadd.s32 1, %s412_s15   ;;  %s91_s19 = sadd.s32 1, %s408_s14 }
   0x5   : > { %s88_s20 = ssub.s32 %s412_s15, %s460_s18  ;;  %p101_p0 = scmp.ne.s32.totalorder %s408_s14, %s404_s13 }
   0x6   : > { %p89_p1 = scmp.eq.s32.totalorder %s88_s20, 0  ;;  %p102_p2 = scmp.eq.s32.totalorder %s456_s16, 1 }
   0x7   : > { %p107_p3 = scmp.ne.s32.totalorder %s404_s13, %s400_s12  ;;  %p108_p4 = scmp.eq.s32.totalorder %s296_s17, 1 }
   0x8   : > { %s471_s21 = scalar_select %p89_p1, %s408_s14, %s91_s19  }
   0x9   : > { %p473_p5 = por %p102_p2, %p101_p0  ;;  %p477_p6 = por %p108_p4, %p107_p3 }
   0xa   : > { %p299_p7 = scmp.ge.s32.totalorder %s412_s15, 1  ;;  %p140_p8 = scmp.lt.s32.totalorder %s412_s15, 3 }
   0xc   : > { %p141_p9 = pnand %p299_p7, %p140_p8 }
   0xd   : > { %p164_p10 = scmp.lt.s32.totalorder (!%p141_p9), %s456_s16, 1  ;;  %v303_v0 = vld [vmem:[%s542_s1] ss:$0 sm:$0xff] (!%p141_p9)  ;;  %s161_s6 = sand.u32 (!%p141_p9), 1, %s404_s13   ;;  %vm221_vm0 = vcmask (!%p141_p9), 130048  }
   0xe   : > { %144 = sbr.rel (%p141_p9) target bundleno = 173 (0xad), region = 32  ;;  %v304_v2 = vld [vmem:[%s543_s2] ss:$0 sm:$0xff] (!%p141_p9)  ;;  %s300_s7 = sshll.u32 (!%p141_p9), %s161_s6, 3 }
   0xf   : > { %s306_s8 = sshll.u32 (!%p141_p9), %s456_s16, 7  ;;  %s163_s9 = scalar_lea.vmem (!%p141_p9), [#allocation2], %s300_s7 }
  0x10   : > { %s237_s10 = sshll.u32 (!%p141_p9), %s163_s9, 4  ;;  %s499_s19 = scalar_lea.hbm (!%p141_p9), %s544_s3, %s306_s8  ;;  %s501_s10 = int_to_ptr.vmem [resolvable:$true] %s237_s10 }
  0x11   : > { %s224_s20 = scalar_lea.sflag (!%p141_p9), [#allocation3], %s161_s6 }
  0x15   : > { %s165_s24 = scalar_select %p164_p10, %s456_s16, 1 }
  0x16   : > { %s414_s16 = smov [#allocation2]  }
  0x17   : > { %s309_s25 = sshll.u32 %s165_s24, 4  ;;  %s350_s24 = scalar_lea.vmem %s501_s10, 128 }
  0x18   : > { %s168_s30 = scalar_lea.vmem %s541_s0, %s309_s25  ;;  %p351_p11 = scmp.ne.s32.totalorder %s501_s10, %s350_s24 }
  0x19   : > { %v169_v1 = vld [vmem:[%s168_s30] sm:$0xff]  ;;  %v170_v3 = vld [vmem:[%s168_s30 + $0x8] sm:$0xff]  ;;  %s354_s25 = sshll.u32 %s414_s16, 4  ;;  %s355_s25 = int_to_ptr.vmem [resolvable:$false] %s354_s25 }
  0x1a   : > { %v178_v4 = vmul.f32 %v303_v0, %v169_v1  ;;  %v179_v5 = vmul.f32 %v303_v0, %v170_v3  ;;  %p352_p12 = pnand %p351_p11, %p473_p5  ;;  %s356_s26 = scalar_lea.vmem %s355_s25, 256 }
  0x1b   : > { %p357_p0 = scmp.lt.s32.totalorder %s501_s10, %s355_s25  ;;  %p358_p1 = scmp.lt.s32.totalorder %s356_s26, %s350_s24 }
  0x1c   : > { %v187_v6 = vadd.f32 %v304_v2, %v178_v4  ;;  %v188_v7 = vadd.f32 %v304_v2, %v179_v5  ;;  %p353_p13 = pneg %p352_p12 }
  0x1d   : > { %p359_p2 = por %p358_p1, %p357_p0 }
  0x1e   : > { %189 = vxpose.xlu0.b32.start [1/2] (short) (narrow) %v187_v6, 8 }
  0x1f   : > { %p360_p3 = pnand %p359_p2, %p353_p13 }
  0x22   : > { %190 = vxpose.xlu0.b32.end [2/2] (short) (narrow) %v188_v7, 8 }
  0x9e   : > { %v205_v8 = vpop.trf.xlu0 }
  0x9f   : > { %222 = vst.msk [vmem:[%s163_s9] sm:$0xff] %vm221_vm0, %v205_v8 }
  0xa0   : > { %363 = shalt.err (!%p360_p3)
}
  0xa1   : > { %s364_s27 = scalar_lea.hbm %s499_s19, 128  ;;  %s368_s30 = scalar_lea.hbm %s544_s3, 256 }
  0xa2   : > { %p365_p4 = scmp.ne.s32.totalorder %s499_s19, %s364_s27  ;;  %p369_p9 = scmp.lt.u32.totalorder %s499_s19, %s544_s3 }
  0xa3   : > { %p370_p10 = scmp.lt.u32.totalorder %s368_s30, %s364_s27  ;;  %p372_p12 = scmp.lt.u32.totalorder %s364_s27, %s499_s19 }
  0xa4   : > { %p366_p7 = pnand %p365_p4, %p473_p5 }
  0xa5   : > { %p371_p11 = por %p370_p10, %p369_p9 }
  0xa6   : > { %p367_p8 = pneg %p366_p7 }
  0xa7   : > { %p373_p13 = por %p372_p12, %p371_p11 }
  0xa9   : > { %p374_p0 = pnand %p373_p13, %p367_p8 }
  0xab   : > { %377 = shalt.err (!%p374_p0)
}
  0xac   : > { %310 = dma.vmem_to_hbm [thread:$0]  (%p473_p5), %s501_s10, 128, %s499_s19, %s224_s20  }
  0xad PF: > { %p316_p1 = scmp.ge.s32.totalorder %s412_s15, 2  ;;  %s249_s6 = sand.u32 1, %s400_s12  }
  0xae   : > { %s250_s7 = scalar_lea.sflag [#allocation3], %s249_s6 }
  0xaf   : > { %p313_p2 = pnand %p316_p1, %p477_p6 }
  0xb1   : > { %395 = dma.done.wait (!%p313_p2), %s250_s7, 128  }
  0xb2   : > { %397 = vsyncadd (!%p313_p2), %s250_s7, 4294967168  ;;  %p13_p3 = scmp.ge.s32.totalorder %s460_s18, 4   ;;  %s547_s12 = smov %s404_s13 }
  0xb3   : > { %s548_s13 = smov %s408_s14  ;;  %s549_s14 = smov %s471_s21 }
  0xb4   : > { %s550_s15 = smov %s460_s18  ;;  %15 = sbr.rel (!%p13_p3) target bundleno = 3 (0x3), region = 67 }
  0xbb   :  { %255 = vsyncpa [#allocation3], 1 }
  0xbc   :  { %257 = vsyncpa [#allocation3 + $0x1], 1 }

// kernel: conv_block.3
= control target key start
LH: loop header
LB: loop body
LE: loop exit
PB: predicated region body
PF: predicated region fallthrough
CT: control target
= control target key end

     0   :  { %s491_s12 = smov 0   ;;  %s579_s0 = inlined_call_operand.vmem [shape: f32[2,16,128], index: 0, kind: input, shape index: {}]   ;;  %s580_s1 = inlined_call_operand.vmem [shape: f32[1,128,128], index: 1, kind: input, shape index: {}]   ;;  %s581_s2 = inlined_call_operand.vmem [shape: f32[2,16,128], index: 2, kind: output, shape index: {0}]   ;;  %s582_s3 = inlined_call_operand.vmem [shape: f32[2,128], index: 3, kind: output, shape index: {1}]  }
   0x1 LB: > { %s354_s13 = sadd.s32 4294967295, %s468_s12   ;;  %p358_p0 = scmp.ge.s32.totalorder %s468_s12, 1  ;;  %s468_s12 = sphi %s491_s12, %s14_s12  }
   0x2   : > { %p135_p1 = scmp.lt.s32.totalorder %s468_s12, 3 }
   0x4   : > { %p136_p2 = pnand %p358_p0, %p135_p1 }
   0x5   : > { %p159_p3 = scmp.lt.s32.totalorder (!%p136_p2), %s354_s13, 1  ;;  %p363_p4 = scmp.ne.s32.totalorder (!%p136_p2), %s354_s13, 0 }
   0x6   : > { %139 = sbr.rel (%p136_p2) target bundleno = 290 (0x122), region = 28 }
   0xd   : > { %s160_s14 = scalar_select %p159_p3, %s354_s13, 1 }
   0xe   : > { %172 = sbr.rel (%p363_p4) target bundleno = 21 (0x15), region = 32  ;;  %v470_v0 = vmov (!%p363_p4), 0.0  }
   0xf   : > { %s366_s15 = sshll.u32 %s160_s14, 4  ;;  %173 = vst [vmem:[%s582_s3] sm:$0x3] (!%p363_p4), %v470_v0 }
  0x10   : > { %s502_s18 = scalar_lea.vmem %s579_s0, %s366_s15  ;;  %s507_s21 = scalar_lea.vmem %s581_s2, %s366_s15 }
  0x15 PF: > { %v176_v1 = vld [vmem:[%s580_s1] sm:$0xff]  ;;  %v177_v2 = vld [vmem:[%s580_s1 + $0x8] sm:$0xff]  ;;  %v178_v3 = vld [vmem:[%s580_s1 + $0x10] sm:$0xff] }
  0x16   : > { %v421_v4 = vpack.c.bf16 %v177_v2, %v176_v1  ;;  %v179_v5 = vld [vmem:[%s580_s1 + $0x18] sm:$0xff]  ;;  %v180_v7 = vld [vmem:[%s580_s1 + $0x20] sm:$0xff]  ;;  %v181_v8 = vld [vmem:[%s580_s1 + $0x28] sm:$0xff] }
  0x17   : > { %v425_v6 = vpack.c.bf16 %v179_v5, %v178_v3  ;;  %v429_v9 = vpack.c.bf16 %v181_v8, %v180_v7  ;;  %v174_v10 = vld [vmem:[%s502_s18] sm:$0xff]  ;;  %v182_v11 = vld [vmem:[%s580_s1 + $0x30] sm:$0xff]  ;;  %v183_v12 = vld [vmem:[%s580_s1 + $0x38] sm:$0xff] }
  0x18   : > { %422 = vmatprep.subr.bf16.mxu0 %v421_v4  ;;  %418 = vmatprep.mubr.f32.mxu0 %v174_v10  ;;  %v433_v13 = vpack.c.bf16 %v183_v12, %v182_v11  ;;  %v184_v14 = vld [vmem:[%s580_s1 + $0x40] sm:$0xff]  ;;  %v185_v15 = vld [vmem:[%s580_s1 + $0x48] sm:$0xff]  ;;  %v186_v17 = vld [vmem:[%s580_s1 + $0x50] sm:$0xff] }
  0x19   : > { %424 = vmatpush3.bf16.msra.mxu0 %v421_v4  ;;  %v437_v16 = vpack.c.bf16 %v185_v15, %v184_v14  ;;  %v187_v18 = vld [vmem:[%s580_s1 + $0x58] sm:$0xff]  ;;  %v188_v20 = vld [vmem:[%s580_s1 + $0x60] sm:$0xff]  ;;  %v189_v21 = vld [vmem:[%s580_s1 + $0x68] sm:$0xff] }
  0x1a   : > { %426 = vmatprep.subr.bf16.mxu0 %v425_v6  ;;  %v441_v19 = vpack.c.bf16 %v187_v18, %v186_v17  ;;  %v445_v22 = vpack.c.bf16 %v189_v21, %v188_v20  ;;  %v190_v23 = vld [vmem:[%s580_s1 + $0x70] sm:$0xff]  ;;  %v191_v24 = vld [vmem:[%s580_s1 + $0x78] sm:$0xff]  ;;  %v175_v26 = vld [vmem:[%s502_s18 + $0x8] sm:$0xff] }
  0x1b   : > { %v449_v25 = vpack.c.bf16 %v191_v24, %v190_v23  ;;  %v271_v44 = vld [vmem:[%s582_s3] sm:$0x1]  ;;  %v281_v47 = vld [vmem:[%s582_s3 + $0x1] sm:$0x1] }
  0x1d   : > { %428 = vmatpush3.bf16.msra.mxu0 %v425_v6 }
  0x1e   : > { %430 = vmatprep.subr.bf16.mxu0 %v429_v9 }
  0x21   : > { %432 = vmatpush3.bf16.msra.mxu0 %v429_v9 }
  0x22   : > { %434 = vmatprep.subr.bf16.mxu0 %v433_v13 }
  0x25   : > { %436 = vmatpush3.bf16.msra.mxu0 %v433_v13 }
  0x26   : > { %438 = vmatprep.subr.bf16.mxu0 %v437_v16 }
  0x29   : > { %440 = vmatpush3.bf16.msra.mxu0 %v437_v16 }
  0x2a   : > { %442 = vmatprep.subr.bf16.mxu0 %v441_v19 }
  0x2d   : > { %444 = vmatpush3.bf16.msra.mxu0 %v441_v19 }
  0x2e   : > { %446 = vmatprep.subr.bf16.mxu0 %v445_v22 }
  0x31   : > { %448 = vmatpush3.bf16.msra.mxu0 %v445_v22 }
  0x32   : > { %450 = vmatprep.subr.bf16.mxu0 %v449_v25 }
  0x35   : > { %452 = vmatpush3.bf16.msra.mxu0 %v449_v25 }
  0x38   : > { %419 = vmatmul.mubr.f32.vlgmr.msra.gmra.mrb[0].mxu0 %v175_v26 }
 0x10b   : > { %v420_v27 = vpop.f32.mrb[0].mxu0 }
 0x10c   : > { %v268_v28 = vmax.f32 %v420_v27, 0.0  ;;  %v258_v29 = vpop.f32.mrb[1].mxu0 }
 0x10d   : > { %v267_v30 = vmax.f32 %v258_v29, 0.0 }
 0x10e   : > { %270 = vst [vmem:[%s507_s21 + $0x8] sm:$0xff] %v268_v28  ;;  %v283_v31 = vmul.f32 %v268_v28, %v268_v28 }
 0x10f   : > { %269 = vst [vmem:[%s507_s21] sm:$0xff] %v267_v30  ;;  %v272_v32 = vadd.f32 %v268_v28, %v267_v30  ;;  %v282_v33 = vmul.f32 %v267_v30, %v267_v30 }
 0x111   : > { %v273_v34 = vrot.slane %v272_v32, 4  ;;  %v284_v35 = vadd.f32 %v283_v31, %v282_v33 }
 0x113   : > { %v274_v36 = vadd.f32 %v273_v34, %v272_v32  ;;  %v285_v37 = vrot.slane %v284_v35, 4 }
 0x115   : > { %v275_v38 = vrot.slane %v274_v36, 2  ;;  %v286_v39 = vadd.f32 %v285_v37, %v284_v35 }
 0x117   : > { %v276_v40 = vadd.f32 %v275_v38, %v274_v36  ;;  %v287_v41 = vrot.slane %v286_v39, 2 }
 0x119   : > { %v277_v42 = vrot.slane %v276_v40, 1  ;;  %v288_v43 = vadd.f32 %v287_v41, %v286_v39 }
 0x11b   : > { %v278_v45 = vadd.f32 %v277_v42, %v276_v40  ;;  %v289_v46 = vrot.slane %v288_v43, 1 }
 0x11d   : > { %v279_v48 = vadd.f32 %v278_v45, %v271_v44  ;;  %v290_v49 = vadd.f32 %v289_v46, %v288_v43 }
 0x11f   : > { %280 = vst [vmem:[%s582_s3] sm:$0x1] %v279_v48  ;;  %v291_v50 = vadd.f32 %v290_v49, %v281_v47 }
 0x121   : > { %292 = vst [vmem:[%s582_s3 + $0x1] sm:$0x1] %v291_v50 }
 0x122 PF: > { %s14_s12 = sadd.s32 1, %s468_s12  }
 0x123   : > { %p11_p5 = scmp.ge.s32.totalorder %s14_s12, 4  }
 0x125   :  { %13 = sbr.rel (!%p11_p5) target bundleno = 1 (0x1), region = 70 }

// kernel: conv_block.4
= control target key start
LH: loop header
LB: loop body
LE: loop exit
PB: predicated region body
PF: predicated region fallthrough
CT: control target
= control target key end

     0   :  { %s1775_s18 = smov 0   ;;  %s2157_s0 = inlined_call_operand.vmem [shape: f32[2,16,128], index: 0, kind: input, shape index: {}]   ;;  %s2158_s1 = inlined_call_operand.vmem [shape: f32[1,128], index: 1, kind: input, shape index: {}]   ;;  %s2159_s2 = inlined_call_operand.vmem [shape: f32[1,128], index: 2, kind: input, shape index: {}]   ;;  %s2160_s3 = inlined_call_operand.vmem [shape: f32[7,128,128], index: 3, kind: input, shape index: {}]   ;;  %s2161_s4 = inlined_call_operand.vmem [shape: f32[2,16,128], index: 4, kind: output, shape index: {0}]   ;;  %s2162_s5 = inlined_call_operand.vmem [shape: f32[2,128], index: 5, kind: output, shape index: {1}]  }
   0x1 LB: > { %s1008_s19 = sadd.s32 4294967295, %s1742_s18   ;;  %p1012_p0 = scmp.ge.s32.totalorder %s1742_s18, 1  ;;  %s1742_s18 = sphi %s1775_s18, %s16_s18  }
   0x2   : > { %p185_p1 = scmp.lt.s32.totalorder %s1742_s18, 3 }
   0x4   : > { %p186_p2 = pnand %p1012_p0, %p185_p1 }
   0x5   : > { %p213_p3 = scmp.lt.s32.totalorder (!%p186_p2), %s1008_s19, 1  ;;  %p1017_p4 = scmp.ne.s32.totalorder (!%p186_p2), %s1008_s19, 0 }
   0x6   : > { %189 = sbr.rel (%p186_p2) target bundleno = 389 (0x185), region = 36 }
   0xd   : > { %s214_s20 = scalar_select %p213_p3, %s1008_s19, 1 }
   0xe   : > { %226 = sbr.rel (%p1017_p4) target bundleno = 21 (0x15), region = 40  ;;  %v1744_v0 = vmov (!%p1017_p4), 0.0  }
   0xf   : > { %s1118_s21 = sshll.u32 %s214_s20, 4  ;;  %227 = vst [vmem:[%s2162_s5] sm:$0x3] (!%p1017_p4), %v1744_v0  ;;  %229 = vst [vmem:[#allocation2 + $0x8] sm:$0xff] (!%p1017_p4), %v1744_v0 }
  0x10   : > { %s1786_s24 = scalar_lea.vmem %s2157_s0, %s1118_s21  ;;  %s1791_s27 = scalar_lea.vmem %s2161_s4, %s1118_s21  ;;  %230 = vst [vmem:[#allocation2 + $0x20] sm:$0xff] (!%p1017_p4), %v1744_v0 }
  0x15 PF: > { %v1020_v1 = vld [vmem:[%s2160_s3 + $0x80] sm:$0xff]  ;;  %v1021_v2 = vld [vmem:[%s2160_s3 + $0x88] sm:$0xff]  ;;  %v1022_v6 = vld [vmem:[%s2160_s3 + $0x90] sm:$0xff] }
  0x16   : > { %v1052_v3 = vld [vmem:[%s2160_s3 + $0x180] sm:$0xff]  ;;  %v1491_v4 = vpack.c.bf16 %v1021_v2, %v1020_v1  ;;  %v1053_v5 = vld [vmem:[%s2160_s3 + $0x188] sm:$0xff]  ;;  %v1023_v7 = vld [vmem:[%s2160_s3 + $0x98] sm:$0xff] }
  0x17   : > { %v1587_v8 = vpack.c.bf16 %v1053_v5, %v1052_v3  ;;  %v1495_v9 = vpack.c.bf16 %v1023_v7, %v1022_v6  ;;  %v1054_v10 = vld [vmem:[%s2160_s3 + $0x190] sm:$0xff]  ;;  %v1055_v11 = vld [vmem:[%s2160_s3 + $0x198] sm:$0xff]  ;;  %v1024_v12 = vld [vmem:[%s2160_s3 + $0xa0] sm:$0xff] }
  0x18   : > { %1492 = vmatprep.subr.bf16.mxu1 %v1491_v4  ;;  %v1591_v13 = vpack.c.bf16 %v1055_v11, %v1054_v10  ;;  %v1025_v14 = vld [vmem:[%s2160_s3 + $0xa8] sm:$0xff]  ;;  %v1056_v15 = vld [vmem:[%s2160_s3 + $0x1a0] sm:$0xff]  ;;  %v1026_v19 = vld [vmem:[%s2160_s3 + $0xb0] sm:$0xff] }
  0x19   : > { %v1057_v16 = vld [vmem:[%s2160_s3 + $0x1a8] sm:$0xff]  ;;  %1588 = vmatprep.subr.bf16.mxu0 %v1587_v8  ;;  %1494 = vmatpush3.bf16.msra.mxu1 %v1491_v4  ;;  %v1499_v17 = vpack.c.bf16 %v1025_v14, %v1024_v12  ;;  %v1027_v20 = vld [vmem:[%s2160_s3 + $0xb8] sm:$0xff]  ;;  %v1058_v21 = vld [vmem:[%s2160_s3 + $0x1b0] sm:$0xff] }
  0x1a   : > { %1590 = vmatpush3.bf16.msra.mxu0 %v1587_v8  ;;  %1496 = vmatprep.subr.bf16.mxu1 %v1495_v9  ;;  %v1595_v18 = vpack.c.bf16 %v1057_v16, %v1056_v15  ;;  %v1059_v22 = vld [vmem:[%s2160_s3 + $0x1b8] sm:$0xff]  ;;  %v1503_v23 = vpack.c.bf16 %v1027_v20, %v1026_v19  ;;  %v1028_v24 = vld [vmem:[%s2160_s3 + $0xc0] sm:$0xff]  ;;  %v1029_v26 = vld [vmem:[%s2160_s3 + $0xc8] sm:$0xff] }
  0x1b   : > { %1592 = vmatprep.subr.bf16.mxu0 %v1591_v13  ;;  %v1599_v25 = vpack.c.bf16 %v1059_v22, %v1058_v21  ;;  %v1060_v27 = vld [vmem:[%s2160_s3 + $0x1c0] sm:$0xff]  ;;  %v1061_v29 = vld [vmem:[%s2160_s3 + $0x1c8] sm:$0xff]  ;;  %v1507_v33 = vpack.c.bf16 %v1029_v26, %v1028_v24  ;;  %v1030_v36 = vld [vmem:[%s2160_s3 + $0xd0] sm:$0xff] }
  0x1c   : > { %v232_v28 = vld [vmem:[%s1786_s24] sm:$0xff]  ;;  %v233_v34 = vld [vmem:[%s1786_s24 + $0x8] sm:$0xff]  ;;  %v1603_v35 = vpack.c.bf16 %v1061_v29, %v1060_v27  ;;  %v1031_v37 = vld [vmem:[%s2160_s3 + $0xd8] sm:$0xff] }
  0x1d   : > { %1498 = vmatpush3.bf16.msra.mxu1 %v1495_v9  ;;  %v1018_v30 = vld [vmem:[%s2158_s1] ss:$0 sm:$0xff]  ;;  %v1062_v40 = vld [vmem:[%s2160_s3 + $0x1d0] sm:$0xff]  ;;  %v1063_v41 = vld [vmem:[%s2160_s3 + $0x1d8] sm:$0xff]  ;;  %v1511_v43 = vpack.c.bf16 %v1031_v37, %v1030_v36 }
  0x1e   : > { %1594 = vmatpush3.bf16.msra.mxu0 %v1591_v13  ;;  %1500 = vmatprep.subr.bf16.mxu1 %v1499_v17  ;;  %v1019_v31 = vld [vmem:[%s2159_s2] ss:$0 sm:$0xff]  ;;  %v241_v32 = vmul.f32 %v1018_v30, %v232_v28  ;;  %v242_v39 = vmul.f32 %v1018_v30, %v233_v34  ;;  %v1607_v44 = vpack.c.bf16 %v1063_v41, %v1062_v40  ;;  %v1033_v46 = vld [vmem:[%s2160_s3 + $0xe8] sm:$0xff]  ;;  %v1034_v51 = vld [vmem:[%s2160_s3 + $0xf0] sm:$0xff] }
  0x1f   : > { %1596 = vmatprep.subr.bf16.mxu0 %v1595_v18  ;;  %v1032_v45 = vld [vmem:[%s2160_s3 + $0xe0] sm:$0xff]  ;;  %v1065_v48 = vld [vmem:[%s2160_s3 + $0x1e8] sm:$0xff]  ;;  %v1035_v52 = vld [vmem:[%s2160_s3 + $0xf8] sm:$0xff] }
  0x20   : > { %v250_v38 = vadd.f32 %v1019_v31, %v241_v32  ;;  %v251_v42 = vadd.f32 %v1019_v31, %v242_v39  ;;  %v1064_v47 = vld [vmem:[%s2160_s3 + $0x1e0] sm:$0xff]  ;;  %v1515_v49 = vpack.c.bf16 %v1033_v46, %v1032_v45  ;;  %v1066_v53 = vld [vmem:[%s2160_s3 + $0x1f0] sm:$0xff]  ;;  %v1067_v54 = vld [vmem:[%s2160_s3 + $0x1f8] sm:$0xff]  ;;  %v1519_v56 = vpack.c.bf16 %v1035_v52, %v1034_v51 }
  0x21   : > { %1502 = vmatpush3.bf16.msra.mxu1 %v1499_v17  ;;  %v1611_v50 = vpack.c.bf16 %v1065_v48, %v1064_v47  ;;  %v1615_v57 = vpack.c.bf16 %v1067_v54, %v1066_v53  ;;  %v256_v58 = vld [vmem:[%s2160_s3] sm:$0xff]  ;;  %v257_v59 = vld [vmem:[%s2160_s3 + $0x8] sm:$0xff]  ;;  %v258_v0 = vld [vmem:[%s2160_s3 + $0x10] sm:$0xff] }
  0x22   : > { %1598 = vmatpush3.bf16.msra.mxu0 %v1595_v18  ;;  %1504 = vmatprep.subr.bf16.mxu1 %v1503_v23  ;;  %252 = vst [vmem:[#allocation2 + $0x10] sm:$0xff] %v250_v38  ;;  %253 = vst [vmem:[#allocation2 + $0x18] sm:$0xff] %v251_v42  ;;  %v1068_v60 = vld [vmem:[%s2160_s3 + $0x200] sm:$0xff]  ;;  %v1069_v61 = vld [vmem:[%s2160_s3 + $0x208] sm:$0xff]  ;;  %v1523_v62 = vpack.c.bf16 %v257_v59, %v256_v58 }
  0x23   : > { %1600 = vmatprep.subr.bf16.mxu0 %v1599_v25  ;;  %1383 = vmatprep.mubr.f32.mxu0 %v250_v38  ;;  %v1619_v63 = vpack.c.bf16 %v1069_v61, %v1068_v60  ;;  %v259_v1 = vld [vmem:[%s2160_s3 + $0x18] sm:$0xff]  ;;  %v1070_v2 = vld [vmem:[%s2160_s3 + $0x210] sm:$0xff]  ;;  %v260_v7 = vld [vmem:[%s2160_s3 + $0x20] sm:$0xff] }
  0x24   : > { %v1071_v3 = vld [vmem:[%s2160_s3 + $0x218] sm:$0xff]  ;;  %v1527_v5 = vpack.c.bf16 %v259_v1, %v258_v0  ;;  %v261_v8 = vld [vmem:[%s2160_s3 + $0x28] sm:$0xff]  ;;  %v1072_v9 = vld [vmem:[%s2160_s3 + $0x220] sm:$0xff] }
  0x25   : > { %1506 = vmatpush3.bf16.msra.mxu1 %v1503_v23  ;;  %v1623_v6 = vpack.c.bf16 %v1071_v3, %v1070_v2  ;;  %v1073_v10 = vld [vmem:[%s2160_s3 + $0x228] sm:$0xff]  ;;  %v1531_v13 = vpack.c.bf16 %v261_v8, %v260_v7  ;;  %v262_v15 = vld [vmem:[%s2160_s3 + $0x30] sm:$0xff]  ;;  %v263_v16 = vld [vmem:[%s2160_s3 + $0x38] sm:$0xff] }
  0x26   : > { %1602 = vmatpush3.bf16.msra.mxu0 %v1599_v25  ;;  %1508 = vmatprep.subr.bf16.mxu1 %v1507_v33  ;;  %v1627_v14 = vpack.c.bf16 %v1073_v10, %v1072_v9  ;;  %v1074_v17 = vld [vmem:[%s2160_s3 + $0x230] sm:$0xff]  ;;  %v1075_v18 = vld [vmem:[%s2160_s3 + $0x238] sm:$0xff]  ;;  %v1535_v19 = vpack.c.bf16 %v263_v16, %v262_v15  ;;  %v264_v21 = vld [vmem:[%s2160_s3 + $0x40] sm:$0xff] }
  0x27   : > { %1604 = vmatprep.subr.bf16.mxu0 %v1603_v35  ;;  %v1631_v20 = vpack.c.bf16 %v1075_v18, %v1074_v17  ;;  %v265_v22 = vld [vmem:[%s2160_s3 + $0x48] sm:$0xff]  ;;  %v1076_v23 = vld [vmem:[%s2160_s3 + $0x240] sm:$0xff]  ;;  %v266_v27 = vld [vmem:[%s2160_s3 + $0x50] sm:$0xff] }
  0x28   : > { %v1077_v24 = vld [vmem:[%s2160_s3 + $0x248] sm:$0xff]  ;;  %v1539_v25 = vpack.c.bf16 %v265_v22, %v264_v21  ;;  %v267_v28 = vld [vmem:[%s2160_s3 + $0x58] sm:$0xff]  ;;  %v1078_v29 = vld [vmem:[%s2160_s3 + $0x250] sm:$0xff] }
  0x29   : > { %1510 = vmatpush3.bf16.msra.mxu1 %v1507_v33  ;;  %v272_v55 = vld [vmem:[#allocation2 + $0xe] sm:$0xff]  ;;  %v273_v4 = vld [vmem:[#allocation2 + $0x16] sm:$0xff]  ;;  %v1635_v26 = vpack.c.bf16 %v1077_v24, %v1076_v23  ;;  %v1543_v31 = vpack.c.bf16 %v267_v28, %v266_v27  ;;  %v268_v33 = vld [vmem:[%s2160_s3 + $0x60] sm:$0xff] }
  0x2a   : > { %1606 = vmatpush3.bf16.msra.mxu0 %v1603_v35  ;;  %1512 = vmatprep.subr.bf16.mxu1 %v1511_v43  ;;  %v254_v11 = vld [vmem:[#allocation2 + $0xd] sm:$0xff]  ;;  %v1079_v30 = vld [vmem:[%s2160_s3 + $0x258] sm:$0xff]  ;;  %v1080_v35 = vld [vmem:[%s2160_s3 + $0x260] sm:$0xff] }
  0x2b   : > { %1608 = vmatprep.subr.bf16.mxu0 %v1607_v44  ;;  %1278 = vmatprep.mubr.f32.mxu1 %v272_v55  ;;  %v633_v12 = vld [vmem:[#allocation2 + $0x11] sm:$0xff]  ;;  %v1639_v32 = vpack.c.bf16 %v1079_v30, %v1078_v29  ;;  %v269_v34 = vld [vmem:[%s2160_s3 + $0x68] sm:$0xff]  ;;  %v1036_v45 = vld [vmem:[%s2160_s3 + $0x100] sm:$0xff] }
  0x2c   : > { %v1081_v36 = vld [vmem:[%s2160_s3 + $0x268] sm:$0xff]  ;;  %v1547_v37 = vpack.c.bf16 %v269_v34, %v268_v33  ;;  %v270_v39 = vld [vmem:[%s2160_s3 + $0x70] sm:$0xff]  ;;  %v271_v40 = vld [vmem:[%s2160_s3 + $0x78] sm:$0xff] }
  0x2d   : > { %1514 = vmatpush3.bf16.msra.mxu1 %v1511_v43  ;;  %v1643_v38 = vpack.c.bf16 %v1081_v36, %v1080_v35  ;;  %v1082_v41 = vld [vmem:[%s2160_s3 + $0x270] sm:$0xff]  ;;  %v1551_v43 = vpack.c.bf16 %v271_v40, %v270_v39  ;;  %v1037_v46 = vld [vmem:[%s2160_s3 + $0x108] sm:$0xff]  ;;  %v1084_v47 = vld [vmem:[%s2160_s3 + $0x280] sm:$0xff] }
  0x2e   : > { %1610 = vmatpush3.bf16.msra.mxu0 %v1607_v44  ;;  %1516 = vmatprep.subr.bf16.mxu1 %v1515_v49  ;;  %v1085_v48 = vld [vmem:[%s2160_s3 + $0x288] sm:$0xff]  ;;  %v1038_v51 = vld [vmem:[%s2160_s3 + $0x110] sm:$0xff]  ;;  %v1039_v52 = vld [vmem:[%s2160_s3 + $0x118] sm:$0xff] }
  0x2f   : > { %1612 = vmatprep.subr.bf16.mxu0 %v1611_v50  ;;  %v1086_v53 = vld [vmem:[%s2160_s3 + $0x290] sm:$0xff]  ;;  %v1087_v54 = vld [vmem:[%s2160_s3 + $0x298] sm:$0xff]  ;;  %v1040_v59 = vld [vmem:[%s2160_s3 + $0x120] sm:$0xff] }
  0x30   : > { %v255_v55 = vld [vmem:[#allocation2 + $0x15] sm:$0xff]  ;;  %v1655_v58 = vpack.c.bf16 %v1087_v54, %v1086_v53  ;;  %v1041_v60 = vld [vmem:[%s2160_s3 + $0x128] sm:$0xff]  ;;  %v1088_v61 = vld [vmem:[%s2160_s3 + $0x2a0] sm:$0xff] }
  0x31   : > { %1518 = vmatpush3.bf16.msra.mxu1 %v1515_v49  ;;  %v1555_v49 = vpack.c.bf16 %v1037_v46, %v1036_v45  ;;  %v729_v0 = vld [vmem:[#allocation2 + $0x12] sm:$0xff]  ;;  %v1563_v1 = vpack.c.bf16 %v1041_v60, %v1040_v59  ;;  %v1044_v9 = vld [vmem:[%s2160_s3 + $0x140] sm:$0xff]  ;;  %v1045_v10 = vld [vmem:[%s2160_s3 + $0x148] sm:$0xff] }
  0x32   : > { %1614 = vmatpush3.bf16.msra.mxu0 %v1611_v50  ;;  %1520 = vmatprep.subr.bf16.mxu1 %v1519_v56  ;;  %v1651_v50 = vpack.c.bf16 %v1085_v48, %v1084_v47  ;;  %v1042_v3 = vld [vmem:[%s2160_s3 + $0x130] sm:$0xff]  ;;  %v1047_v16 = vld [vmem:[%s2160_s3 + $0x158] sm:$0xff]  ;;  %v1048_v21 = vld [vmem:[%s2160_s3 + $0x160] sm:$0xff] }
  0x33   : > { %1616 = vmatprep.subr.bf16.mxu0 %v1615_v57  ;;  %v1046_v15 = vld [vmem:[%s2160_s3 + $0x150] sm:$0xff]  ;;  %v1095_v18 = vld [vmem:[%s2160_s3 + $0x2d8] sm:$0xff]  ;;  %v1049_v22 = vld [vmem:[%s2160_s3 + $0x168] sm:$0xff] }
  0x34   : > { %v1094_v17 = vld [vmem:[%s2160_s3 + $0x2d0] sm:$0xff]  ;;  %v1096_v23 = vld [vmem:[%s2160_s3 + $0x2e0] sm:$0xff]  ;;  %v1097_v24 = vld [vmem:[%s2160_s3 + $0x2e8] sm:$0xff] }
  0x35   : > { %1522 = vmatpush3.bf16.msra.mxu1 %v1519_v56  ;;  %v634_v56 = vld [vmem:[#allocation2 + $0x19] sm:$0xff]  ;;  %v1050_v27 = vld [vmem:[%s2160_s3 + $0x170] sm:$0xff]  ;;  %v1101_v34 = vld [vmem:[%s2160_s3 + $0x308] sm:$0xff] }
  0x36   : > { %1618 = vmatpush3.bf16.msra.mxu0 %v1615_v57  ;;  %1524 = vmatprep.subr.bf16.mxu1 %v1523_v62  ;;  %v1559_v57 = vpack.c.bf16 %v1039_v52, %v1038_v51  ;;  %v1051_v28 = vld [vmem:[%s2160_s3 + $0x178] sm:$0xff]  ;;  %v1098_v29 = vld [vmem:[%s2160_s3 + $0x2f0] sm:$0xff]  ;;  %v1100_v33 = vld [vmem:[%s2160_s3 + $0x300] sm:$0xff] }
  0x37   : > { %1620 = vmatprep.subr.bf16.mxu0 %v1619_v63  ;;  %v1099_v30 = vld [vmem:[%s2160_s3 + $0x2f8] sm:$0xff]  ;;  %v1683_v35 = vpack.c.bf16 %v1101_v34, %v1100_v33  ;;  %v1102_v36 = vld [vmem:[%s2160_s3 + $0x310] sm:$0xff]  ;;  %v1108_v48 = vld [vmem:[%s2160_s3 + $0x340] sm:$0xff] }
  0x38   : > { %1279 = vmatmul.mubr.f32.vlgmr.msra.gmra.mrb[0].mxu1 %v273_v4  ;;  %v1043_v4 = vld [vmem:[%s2160_s3 + $0x138] sm:$0xff]  ;;  %v1106_v45 = vld [vmem:[%s2160_s3 + $0x330] sm:$0xff]  ;;  %v1112_v54 = vld [vmem:[%s2160_s3 + $0x360] sm:$0xff] }
  0x39   : > { %1526 = vmatpush3.bf16.msra.mxu1 %v1523_v62  ;;  %1384 = vmatmul.mubr.f32.vlgmr.msra.gmra.mrb[0].mxu0 %v251_v42  ;;  %v1083_v42 = vld [vmem:[%s2160_s3 + $0x278] sm:$0xff]  ;;  %v1089_v62 = vld [vmem:[%s2160_s3 + $0x2a8] sm:$0xff]  ;;  %v1567_v7 = vpack.c.bf16 %v1043_v4, %v1042_v3  ;;  %v1110_v51 = vld [vmem:[%s2160_s3 + $0x350] sm:$0xff] }
  0x3a   : > { %1622 = vmatpush3.bf16.msra.mxu0 %v1619_v63  ;;  %1528 = vmatprep.subr.bf16.mxu1 %v1527_v5  ;;  %v1647_v44 = vpack.c.bf16 %v1083_v42, %v1082_v41  ;;  %v441_v63 = vld [vmem:[#allocation2 + $0xf] sm:$0xff]  ;;  %v1659_v2 = vpack.c.bf16 %v1089_v62, %v1088_v61  ;;  %v730_v39 = vld [vmem:[#allocation2 + $0x1a] sm:$0xff] }
  0x3b   : > { %1624 = vmatprep.subr.bf16.mxu0 %v1623_v6  ;;  %1313 = vmatprep.mubr.f32.mxu1 %v254_v11  ;;  %v1092_v11 = vld [vmem:[%s2160_s3 + $0x2c0] sm:$0xff]  ;;  %v825_v41 = vld [vmem:[#allocation2 + $0x13] sm:$0xff] }
  0x3c   : > { %1418 = vmatprep.mubr.f32.mxu0 %v633_v12  ;;  %v1093_v12 = vld [vmem:[%s2160_s3 + $0x2c8] sm:$0xff]  ;;  %v1104_v42 = vld [vmem:[%s2160_s3 + $0x320] sm:$0xff]  ;;  %v1107_v46 = vld [vmem:[%s2160_s3 + $0x338] sm:$0xff] }
  0x3d   : > { %1530 = vmatpush3.bf16.msra.mxu1 %v1527_v5  ;;  %v1090_v5 = vld [vmem:[%s2160_s3 + $0x2b0] sm:$0xff]  ;;  %v1695_v47 = vpack.c.bf16 %v1107_v46, %v1106_v45  ;;  %v1111_v52 = vld [vmem:[%s2160_s3 + $0x358] sm:$0xff] }
  0x3e   : > { %1626 = vmatpush3.bf16.msra.mxu0 %v1623_v6  ;;  %1532 = vmatprep.subr.bf16.mxu1 %v1531_v13  ;;  %v1091_v6 = vld [vmem:[%s2160_s3 + $0x2b8] sm:$0xff]  ;;  %v1703_v53 = vpack.c.bf16 %v1111_v52, %v1110_v51 }
  0x3f   : > { %1628 = vmatprep.subr.bf16.mxu0 %v1627_v14  ;;  %v1663_v8 = vpack.c.bf16 %v1091_v6, %v1090_v5  ;;  %v826_v60 = vld [vmem:[#allocation2 + $0x1b] sm:$0xff] }
  0x41   : > { %1534 = vmatpush3.bf16.msra.mxu1 %v1531_v13  ;;  %v1571_v13 = vpack.c.bf16 %v1045_v10, %v1044_v9 }
  0x42   : > { %1630 = vmatpush3.bf16.msra.mxu0 %v1627_v14  ;;  %1536 = vmatprep.subr.bf16.mxu1 %v1535_v19  ;;  %v1667_v14 = vpack.c.bf16 %v1093_v12, %v1092_v11 }
  0x43   : > { %1632 = vmatprep.subr.bf16.mxu0 %v1631_v20 }
  0x45   : > { %1538 = vmatpush3.bf16.msra.mxu1 %v1535_v19  ;;  %v1575_v19 = vpack.c.bf16 %v1047_v16, %v1046_v15 }
  0x46   : > { %1634 = vmatpush3.bf16.msra.mxu0 %v1631_v20  ;;  %1540 = vmatprep.subr.bf16.mxu1 %v1539_v25  ;;  %v1671_v20 = vpack.c.bf16 %v1095_v18, %v1094_v17  ;;  %v925_v18 = vld [vmem:[%s2162_s5] sm:$0x1] }
  0x47   : > { %1636 = vmatprep.subr.bf16.mxu0 %v1635_v26 }
  0x49   : > { %1542 = vmatpush3.bf16.msra.mxu1 %v1539_v25  ;;  %v1579_v25 = vpack.c.bf16 %v1049_v22, %v1048_v21  ;;  %v935_v21 = vld [vmem:[%s2162_s5 + $0x1] sm:$0x1] }
  0x4a   : > { %1638 = vmatpush3.bf16.msra.mxu0 %v1635_v26  ;;  %1544 = vmatprep.subr.bf16.mxu1 %v1543_v31  ;;  %v1675_v26 = vpack.c.bf16 %v1097_v24, %v1096_v23 }
  0x4b   : > { %1640 = vmatprep.subr.bf16.mxu0 %v1639_v32 }
  0x4d   : > { %1546 = vmatpush3.bf16.msra.mxu1 %v1543_v31  ;;  %v1583_v31 = vpack.c.bf16 %v1051_v28, %v1050_v27 }
  0x4e   : > { %1642 = vmatpush3.bf16.msra.mxu0 %v1639_v32  ;;  %1548 = vmatprep.subr.bf16.mxu1 %v1547_v37  ;;  %v1679_v32 = vpack.c.bf16 %v1099_v30, %v1098_v29 }
  0x4f   : > { %1644 = vmatprep.subr.bf16.mxu0 %v1643_v38 }
  0x51   : > { %1550 = vmatpush3.bf16.msra.mxu1 %v1547_v37  ;;  %v1103_v37 = vld [vmem:[%s2160_s3 + $0x318] sm:$0xff] }
  0x52   : > { %1646 = vmatpush3.bf16.msra.mxu0 %v1643_v38  ;;  %1552 = vmatprep.subr.bf16.mxu1 %v1551_v43  ;;  %v442_v38 = vld [vmem:[#allocation2 + $0x17] sm:$0xff]  ;;  %v1687_v40 = vpack.c.bf16 %v1103_v37, %v1102_v36 }
  0x53   : > { %1648 = vmatprep.subr.bf16.mxu0 %v1647_v44 }
  0x55   : > { %1554 = vmatpush3.bf16.msra.mxu1 %v1551_v43  ;;  %v1105_v43 = vld [vmem:[%s2160_s3 + $0x328] sm:$0xff] }
  0x56   : > { %1650 = vmatpush3.bf16.msra.mxu0 %v1647_v44  ;;  %1556 = vmatprep.subr.bf16.mxu1 %v1555_v49  ;;  %v1691_v44 = vpack.c.bf16 %v1105_v43, %v1104_v42 }
  0x57   : > { %1652 = vmatprep.subr.bf16.mxu0 %v1651_v50 }
  0x58   : > { %1314 = vmatmul.mubr.f32.vlgmr.msra.gmra.mrb[0].mxu1 %v255_v55  ;;  %v1113_v55 = vld [vmem:[%s2160_s3 + $0x368] sm:$0xff] }
  0x59   : > { %1558 = vmatpush3.bf16.msra.mxu1 %v1555_v49  ;;  %1419 = vmatmul.mubr.f32.vlgmr.msra.gmra.mrb[0].mxu0 %v634_v56  ;;  %v1109_v49 = vld [vmem:[%s2160_s3 + $0x348] sm:$0xff]  ;;  %v1707_v56 = vpack.c.bf16 %v1113_v55, %v1112_v54 }
  0x5a   : > { %1654 = vmatpush3.bf16.msra.mxu0 %v1651_v50  ;;  %1560 = vmatprep.subr.bf16.mxu1 %v1559_v57  ;;  %v1699_v50 = vpack.c.bf16 %v1109_v49, %v1108_v48 }
  0x5b   : > { %1656 = vmatprep.subr.bf16.mxu0 %v1655_v58  ;;  %1348 = vmatprep.mubr.f32.mxu1 %v441_v63 }
  0x5c   : > { %1453 = vmatprep.mubr.f32.mxu0 %v729_v0 }
  0x5d   : > { %1562 = vmatpush3.bf16.msra.mxu1 %v1559_v57  ;;  %v1114_v57 = vld [vmem:[%s2160_s3 + $0x370] sm:$0xff] }
  0x5e   : > { %1658 = vmatpush3.bf16.msra.mxu0 %v1655_v58  ;;  %1564 = vmatprep.subr.bf16.mxu1 %v1563_v1  ;;  %v1115_v58 = vld [vmem:[%s2160_s3 + $0x378] sm:$0xff] }
  0x5f   : > { %1660 = vmatprep.subr.bf16.mxu0 %v1659_v2  ;;  %v1711_v59 = vpack.c.bf16 %v1115_v58, %v1114_v57 }
  0x61   : > { %1566 = vmatpush3.bf16.msra.mxu1 %v1563_v1 }
  0x62   : > { %1662 = vmatpush3.bf16.msra.mxu0 %v1659_v2  ;;  %1568 = vmatprep.subr.bf16.mxu1 %v1567_v7 }
  0x63   : > { %1664 = vmatprep.subr.bf16.mxu0 %v1663_v8 }
  0x65   : > { %1570 = vmatpush3.bf16.msra.mxu1 %v1567_v7 }
  0x66   : > { %1666 = vmatpush3.bf16.msra.mxu0 %v1663_v8  ;;  %1572 = vmatprep.subr.bf16.mxu1 %v1571_v13 }
  0x67   : > { %1668 = vmatprep.subr.bf16.mxu0 %v1667_v14 }
  0x69   : > { %1574 = vmatpush3.bf16.msra.mxu1 %v1571_v13 }
  0x6a   : > { %1670 = vmatpush3.bf16.msra.mxu0 %v1667_v14  ;;  %1576 = vmatprep.subr.bf16.mxu1 %v1575_v19 }
  0x6b   : > { %1672 = vmatprep.subr.bf16.mxu0 %v1671_v20 }
  0x6d   : > { %1578 = vmatpush3.bf16.msra.mxu1 %v1575_v19 }
  0x6e   : > { %1674 = vmatpush3.bf16.msra.mxu0 %v1671_v20  ;;  %1580 = vmatprep.subr.bf16.mxu1 %v1579_v25 }
  0x6f   : > { %1676 = vmatprep.subr.bf16.mxu0 %v1675_v26 }
  0x71   : > { %1582 = vmatpush3.bf16.msra.mxu1 %v1579_v25 }
  0x72   : > { %1678 = vmatpush3.bf16.msra.mxu0 %v1675_v26  ;;  %1584 = vmatprep.subr.bf16.mxu1 %v1583_v31 }
  0x73   : > { %1680 = vmatprep.subr.bf16.mxu0 %v1679_v32 }
  0x75   : > { %1586 = vmatpush3.bf16.msra.mxu1 %v1583_v31 }
  0x76   : > { %1682 = vmatpush3.bf16.msra.mxu0 %v1679_v32 }
  0x77   : > { %1684 = vmatprep.subr.bf16.mxu0 %v1683_v35 }
  0x78   : > { %1349 = vmatmul.mubr.f32.vlgmr.msra.gmra.mrb[0].mxu1 %v442_v38 }
  0x79   : > { %1454 = vmatmul.mubr.f32.vlgmr.msra.gmra.mrb[0].mxu0 %v730_v39 }
  0x7a   : > { %1686 = vmatpush3.bf16.msra.mxu0 %v1683_v35  ;;  %1488 = vmatprep.mubr.f32.mxu0 %v825_v41 }
  0x7b   : > { %1688 = vmatprep.subr.bf16.mxu0 %v1687_v40 }
  0x7e   : > { %1690 = vmatpush3.bf16.msra.mxu0 %v1687_v40 }
  0x7f   : > { %1692 = vmatprep.subr.bf16.mxu0 %v1691_v44 }
  0x82   : > { %1694 = vmatpush3.bf16.msra.mxu0 %v1691_v44 }
  0x83   : > { %1696 = vmatprep.subr.bf16.mxu0 %v1695_v47 }
  0x86   : > { %1698 = vmatpush3.bf16.msra.mxu0 %v1695_v47 }
  0x87   : > { %1700 = vmatprep.subr.bf16.mxu0 %v1699_v50 }
  0x8a   : > { %1702 = vmatpush3.bf16.msra.mxu0 %v1699_v50 }
  0x8b   : > { %1704 = vmatprep.subr.bf16.mxu0 %v1703_v53 }
  0x8e   : > { %1706 = vmatpush3.bf16.msra.mxu0 %v1703_v53 }
  0x8f   : > { %1708 = vmatprep.subr.bf16.mxu0 %v1707_v56 }
  0x92   : > { %1710 = vmatpush3.bf16.msra.mxu0 %v1707_v56 }
  0x93   : > { %1712 = vmatprep.subr.bf16.mxu0 %v1711_v59 }
  0x96   : > { %1714 = vmatpush3.bf16.msra.mxu0 %v1711_v59 }
  0x99   : > { %1489 = vmatmul.mubr.f32.vlgmr.msra.gmra.mrb[0].mxu0 %v826_v60 }
 0x14b   : > { %v1350_v61 = vpop.f32.mrb[0].mxu1 }
 0x14c   : > { %v526_v62 = vpop.f32.mrb[1].mxu1 }
 0x16c   : > { %v1490_v63 = vpop.f32.mrb[0].mxu0 }
 0x16d   : > { %v1715_v0 = vadd.f32 %v1490_v63, %v1350_v61  ;;  %v910_v1 = vpop.f32.mrb[1].mxu0 }
 0x16e   : > { %v1716_v2 = vadd.f32 %v910_v1, %v526_v62 }
 0x16f   : > { %v922_v3 = vmax.f32 %v1715_v0, 0.0 }
 0x170   : > { %v921_v4 = vmax.f32 %v1716_v2, 0.0 }
 0x171   : > { %924 = vst [vmem:[%s1791_s27 + $0x8] sm:$0xff] %v922_v3  ;;  %v937_v5 = vmul.f32 %v922_v3, %v922_v3 }
 0x172   : > { %923 = vst [vmem:[%s1791_s27] sm:$0xff] %v921_v4  ;;  %v926_v6 = vadd.f32 %v922_v3, %v921_v4  ;;  %v936_v7 = vmul.f32 %v921_v4, %v921_v4 }
 0x174   : > { %v927_v8 = vrot.slane %v926_v6, 4  ;;  %v938_v9 = vadd.f32 %v937_v5, %v936_v7 }
 0x176   : > { %v928_v10 = vadd.f32 %v927_v8, %v926_v6  ;;  %v939_v11 = vrot.slane %v938_v9, 4 }
 0x178   : > { %v929_v12 = vrot.slane %v928_v10, 2  ;;  %v940_v13 = vadd.f32 %v939_v11, %v938_v9 }
 0x17a   : > { %v930_v14 = vadd.f32 %v929_v12, %v928_v10  ;;  %v941_v15 = vrot.slane %v940_v13, 2 }
 0x17c   : > { %v931_v16 = vrot.slane %v930_v14, 1  ;;  %v942_v17 = vadd.f32 %v941_v15, %v940_v13 }
 0x17e   : > { %v932_v19 = vadd.f32 %v931_v16, %v930_v14  ;;  %v943_v20 = vrot.slane %v942_v17, 1 }
 0x180   : > { %v933_v22 = vadd.f32 %v932_v19, %v925_v18  ;;  %v944_v23 = vadd.f32 %v943_v20, %v942_v17 }
 0x182   : > { %934 = vst [vmem:[%s2162_s5] sm:$0x1] %v933_v22  ;;  %v945_v24 = vadd.f32 %v944_v23, %v935_v21 }
 0x184   : > { %946 = vst [vmem:[%s2162_s5 + $0x1] sm:$0x1] %v945_v24 }
 0x185 PF: > { %s16_s18 = sadd.s32 1, %s1742_s18  }
 0x186   : > { %p13_p5 = scmp.ge.s32.totalorder %s16_s18, 4  }
 0x188   :  { %15 = sbr.rel (!%p13_p5) target bundleno = 1 (0x1), region = 84 }

</bundles_post_ra>
